<compile_context>
chip_gen: v7x
topology: tpu7x:2x2x1
jax: 0.10.0
libtpu: 0.0.40
codegen_flags: <defaults>
</compile_context>

<pallas_src>
import jax
import jax.numpy as jnp
from jax import lax
from jax.experimental import pallas as pl
from jax.experimental.pallas import tpu as pltpu

_LANE = 128


def _round_up(n, m):
    return ((n + m - 1) // m) * m


def mlp_kernel(x_ref, w1_ref, b1_ref, w2_ref, b2_ref, w3_ref, b3_ref, o_ref):
    """Fused MLP, feature-major: batch lives on the 128-lane axis.

    h1 = relu(W1^T x^T + b1)  : (32, tb)
    h2 = relu(W2^T h1  + b2)  : (16, tb)
    o  =      W3^T h2  + b3   : (3,  tb)   -> lane-dense output tile
    """
    x = x_ref[...]                                            # (tb, D_in) f32
    # w1:(D_in,32) contract dim0 with x:(tb,D_in) dim1 -> (32, tb)
    h1 = lax.dot_general(w1_ref[...], x, (((0,), (1,)), ((), ())),
                         preferred_element_type=jnp.float32)
    h1 = jnp.maximum(h1 + b1_ref[...], 0.0)                   # (32, tb)
    # w2:(32,16) contract dim0 with h1:(32,tb) dim0 -> (16, tb)
    h2 = lax.dot_general(w2_ref[...], h1, (((0,), (0,)), ((), ())),
                         preferred_element_type=jnp.float32)
    h2 = jnp.maximum(h2 + b2_ref[...], 0.0)                   # (16, tb)
    # w3:(16,3) contract dim0 with h2:(16,tb) dim0 -> (3, tb)
    o = lax.dot_general(w3_ref[...], h2, (((0,), (0,)), ((), ())),
                        preferred_element_type=jnp.float32)
    o_ref[...] = (o + b3_ref[...]).astype(o_ref.dtype)        # (3, tb)


def my_mlp_forward(x, params, *, tb=1024, out_dtype=jnp.float32):
    """x: [B, inputDim] float32, params f32. Returns [B, 3] (out_dtype).

    tb: requested batch tile (rounded to a multiple of 128, VMEM-capped).
    On v6e sweeping tb in {1024, 2048, 4096} is essentially free; set
    out_dtype=jnp.bfloat16 if downstream consumers tolerate it to halve the
    output write stream.
    """
    B, D_in = x.shape

    w1 = params["w1"].astype(jnp.float32)              # (D_in, 32)
    w2 = params["w2"].astype(jnp.float32)              # (32, 16)
    w3 = params["w3"].astype(jnp.float32)              # (16, 3)
    b1 = params["b1"].reshape(-1, 1).astype(jnp.float32)   # (32, 1) column
    b2 = params["b2"].reshape(-1, 1).astype(jnp.float32)   # (16, 1)
    b3 = params["b3"].reshape(-1, 1).astype(jnp.float32)   # (3, 1)

    # ---- VMEM-aware batch tile (lane/sublane padding accounted) ----------
    x_row = 2 * _round_up(D_in, _LANE) * 4        # f32 x tile, double-buffered, lane-padded
    h_rows = (32 + 16) * 4                         # feature-major f32 intermediates
    out_row = 2 * 8 * 4                            # (3, tb) out tile -> 8 sublanes, dbl-buffered
    bytes_per_row = x_row + h_rows + out_row
    # resident (double-buffered) weights/biases, lane-padded to 128
    w_bytes = 2 * 4 * _LANE * (_round_up(D_in, 8) + 32 + 16 + 32 + 16 + 8)
    vmem_budget = 12 * 1024 * 1024                 # under v5e's ~16 MiB scoped default
    max_tb = max(_LANE, (((vmem_budget - w_bytes) // bytes_per_row) // _LANE) * _LANE)

    tb_eff = max(_LANE, (min(int(tb), max_tb) // _LANE) * _LANE)
    tb_eff = min(tb_eff, _round_up(B, _LANE))      # don't over-tile tiny batches
    if B > tb_eff:
        # keep >= 4 grid steps so both v7x TensorCores get work on the parallel axis
        while tb_eff > _LANE and pl.cdiv(B, tb_eff) < 4:
            tb_eff = max(_LANE, ((tb_eff // 2) // _LANE) * _LANE)

    grid = (pl.cdiv(B, tb_eff),)

    out_t = pl.pallas_call(
        mlp_kernel,
        out_shape=jax.ShapeDtypeStruct((3, B), out_dtype),
        grid_spec=pl.GridSpec(
            grid=grid,
            in_specs=[
                pl.BlockSpec((tb_eff, D_in), lambda i: (i, 0)),   # x tile (native f32, no pad)
                pl.BlockSpec((D_in, 32), lambda i: (0, 0)),       # w1 (VMEM resident)
                pl.BlockSpec((32, 1), lambda i: (0, 0)),          # b1 (column)
                pl.BlockSpec((32, 16), lambda i: (0, 0)),         # w2
                pl.BlockSpec((16, 1), lambda i: (0, 0)),          # b2
                pl.BlockSpec((16, 3), lambda i: (0, 0)),          # w3
                pl.BlockSpec((3, 1), lambda i: (0, 0)),           # b3
            ],
            out_specs=pl.BlockSpec((3, tb_eff), lambda i: (0, i)),  # lane-dense output
        ),
        compiler_params=pltpu.CompilerParams(
            dimension_semantics=("parallel",),       # megacore split on v7x
            vmem_limit_bytes=32 * 1024 * 1024,
        ),
    )(x, w1, b1, w2, b2, w3, b3)

    return out_t.T   # tiny (3, B) -> (B, 3) transpose in the wrapper


def init_params(key, input_dim):
    """Deterministic PyTorch-like init (uniform +-1/sqrt(fan_in))."""
    ks = jax.random.split(key, 6)

    def lin(kw, kb, fan_in, fan_out):
        bound = 1.0 / jnp.sqrt(jnp.float32(fan_in))
        w = jax.random.uniform(kw, (fan_in, fan_out), jnp.float32, -bound, bound)
        b = jax.random.uniform(kb, (fan_out,), jnp.float32, -bound, bound)
        return w, b

    w1, b1 = lin(ks[0], ks[1], input_dim, 32)
    w2, b2 = lin(ks[2], ks[3], 32, 16)
    w3, b3 = lin(ks[4], ks[5], 16, 3)
    return {"w1": w1, "b1": b1, "w2": w2, "b2": b2, "w3": w3, "b3": b3}


def reference_forward(x, p):
    """Plain f32 reference (same semantics as the PyTorch module)."""
    h = jnp.maximum(jnp.dot(x, p["w1"]) + p["b1"], 0.0)
    h = jnp.maximum(jnp.dot(h, p["w2"]) + p["b2"], 0.0)
    return jnp.dot(h, p["w3"]) + p["b3"]


if __name__ == "__main__":
    key = jax.random.PRNGKey(0)
    k_x, k_p, k_x2 = jax.random.split(key, 3)

    input_dim = 16
    batch = 10  # not a multiple of 8/128: exercises the masked partial block
    x = jax.random.normal(k_x, (batch, input_dim), dtype=jnp.float32)
    params = init_params(k_p, input_dim)

    out = jax.block_until_ready(my_mlp_forward(x, params, tb=1024))
    ref = reference_forward(x, params)
    assert out.shape == (batch, 3)
    # Tolerance covers platform-default f32 matmul precision (bf16 MXU passes).
    assert jnp.allclose(out, ref, atol=2e-2, rtol=2e-2), (
        float(jnp.max(jnp.abs(out - ref))))

    # Exercise the multi-step tiled path with a partial final block.
    x2 = jax.random.normal(k_x2, (200, input_dim), dtype=jnp.float32)
    out2 = jax.block_until_ready(my_mlp_forward(x2, params, tb=128))
    ref2 = reference_forward(x2, params)
    assert out2.shape == (200, 3)
    assert jnp.allclose(out2, ref2, atol=2e-2, rtol=2e-2), (
        float(jnp.max(jnp.abs(out2 - ref2))))

    print("KERNEL_OK")
</pallas_src>

<mosaic_0001>
module attributes {stable_mosaic.version = 11 : i64} {
  func.func @mlp_kernel(%arg0: i32, %arg1: memref<128x16xf32, #tpu.memory_space<vmem>>, %arg2: memref<16x32xf32, #tpu.memory_space<vmem>>, %arg3: memref<32x1xf32, #tpu.memory_space<vmem>>, %arg4: memref<32x16xf32, #tpu.memory_space<vmem>>, %arg5: memref<16x1xf32, #tpu.memory_space<vmem>>, %arg6: memref<16x3xf32, #tpu.memory_space<vmem>>, %arg7: memref<3x1xf32, #tpu.memory_space<vmem>>, %arg8: memref<3x128xf32, #tpu.memory_space<vmem>>) attributes {dimension_semantics = [#tpu.dimension_semantics<parallel>], iteration_bounds = array<i64: 1>, scalar_prefetch = 0 : i64, scratch_operands = 0 : i64, tpu.core_type = #tpu.core_type<tc>, window_params = [{transform_indices = @transform_0, window_bounds = array<i64: 128, 16>}, {pipeline_mode = #tpu.pipeline_mode<synchronous>, transform_indices = @transform_1, window_bounds = array<i64: 16, 32>}, {pipeline_mode = #tpu.pipeline_mode<synchronous>, transform_indices = @transform_2, window_bounds = array<i64: 32, 1>}, {pipeline_mode = #tpu.pipeline_mode<synchronous>, transform_indices = @transform_3, window_bounds = array<i64: 32, 16>}, {pipeline_mode = #tpu.pipeline_mode<synchronous>, transform_indices = @transform_4, window_bounds = array<i64: 16, 1>}, {pipeline_mode = #tpu.pipeline_mode<synchronous>, transform_indices = @transform_5, window_bounds = array<i64: 16, 3>}, {pipeline_mode = #tpu.pipeline_mode<synchronous>, transform_indices = @transform_6, window_bounds = array<i64: 3, 1>}, {transform_indices = @transform_7, window_bounds = array<i64: 3, 128>}]} {
    %c0 = arith.constant 0 : index
    %c0_0 = arith.constant 0 : index
    %0 = vector.load %arg1[%c0, %c0_0] : memref<128x16xf32, #tpu.memory_space<vmem>>, vector<128x16xf32>
    %c0_1 = arith.constant 0 : index
    %c0_2 = arith.constant 0 : index
    %1 = vector.load %arg2[%c0_1, %c0_2] : memref<16x32xf32, #tpu.memory_space<vmem>>, vector<16x32xf32>
    %cst = arith.constant dense<0.000000e+00> : vector<32x128xf32>
    %2 = tpu.matmul %1, %0, %cst {dimension_numbers = #tpu.dot_dimension_numbers<[0], [1], [1], [0], [0, 1, 1, 0], [], []>} : vector<16x32xf32>, vector<128x16xf32>, vector<32x128xf32> -> vector<32x128xf32>
    %c0_3 = arith.constant 0 : index
    %c0_4 = arith.constant 0 : index
    %3 = vector.load %arg3[%c0_3, %c0_4] : memref<32x1xf32, #tpu.memory_space<vmem>>, vector<32x1xf32>
    %4 = vector.broadcast %3 : vector<32x1xf32> to vector<32x128xf32>
    %5 = arith.addf %2, %4 : vector<32x128xf32>
    %cst_5 = arith.constant 0.000000e+00 : f32
    %6 = vector.broadcast %cst_5 : f32 to vector<32x128xf32>
    %7 = arith.maximumf %5, %6 : vector<32x128xf32>
    %c0_6 = arith.constant 0 : index
    %c0_7 = arith.constant 0 : index
    %8 = vector.load %arg4[%c0_6, %c0_7] : memref<32x16xf32, #tpu.memory_space<vmem>>, vector<32x16xf32>
    %cst_8 = arith.constant dense<0.000000e+00> : vector<16x128xf32>
    %9 = tpu.matmul %8, %7, %cst_8 {dimension_numbers = #tpu.dot_dimension_numbers<[0], [0], [1], [1], [0, 1, 1, 1], [], []>} : vector<32x16xf32>, vector<32x128xf32>, vector<16x128xf32> -> vector<16x128xf32>
    %c0_9 = arith.constant 0 : index
    %c0_10 = arith.constant 0 : index
    %10 = vector.load %arg5[%c0_9, %c0_10] : memref<16x1xf32, #tpu.memory_space<vmem>>, vector<16x1xf32>
    %11 = vector.broadcast %10 : vector<16x1xf32> to vector<16x128xf32>
    %12 = arith.addf %9, %11 : vector<16x128xf32>
    %cst_11 = arith.constant 0.000000e+00 : f32
    %13 = vector.broadcast %cst_11 : f32 to vector<16x128xf32>
    %14 = arith.maximumf %12, %13 : vector<16x128xf32>
    %c0_12 = arith.constant 0 : index
    %c0_13 = arith.constant 0 : index
    %15 = vector.load %arg6[%c0_12, %c0_13] : memref<16x3xf32, #tpu.memory_space<vmem>>, vector<16x3xf32>
    %cst_14 = arith.constant dense<0.000000e+00> : vector<3x128xf32>
    %16 = tpu.matmul %15, %14, %cst_14 {dimension_numbers = #tpu.dot_dimension_numbers<[0], [0], [1], [1], [0, 1, 1, 1], [], []>} : vector<16x3xf32>, vector<16x128xf32>, vector<3x128xf32> -> vector<3x128xf32>
    %c0_15 = arith.constant 0 : index
    %c0_16 = arith.constant 0 : index
    %17 = vector.load %arg7[%c0_15, %c0_16] : memref<3x1xf32, #tpu.memory_space<vmem>>, vector<3x1xf32>
    %18 = vector.broadcast %17 : vector<3x1xf32> to vector<3x128xf32>
    %19 = arith.addf %16, %18 : vector<3x128xf32>
    %c0_17 = arith.constant 0 : index
    %c0_18 = arith.constant 0 : index
    %20 = vector.load %arg8[%c0_17, %c0_18] : memref<3x128xf32, #tpu.memory_space<vmem>>, vector<3x128xf32>
    tpu.vector_store %arg8[%c0_17, %c0_18], %19 {strides = array<i32>} : memref<3x128xf32, #tpu.memory_space<vmem>>, vector<3x128xf32>,
    return
  }
  func.func @transform_0(%arg0: i32) -> (i32, i32) {
    %c0_i32 = arith.constant 0 : i32
    %c0_i32_0 = arith.constant 0 : i32
    return %arg0, %c0_i32 : i32, i32
  }
  func.func @transform_1(%arg0: i32) -> (i32, i32) {
    %c0_i32 = arith.constant 0 : i32
    %c0_i32_0 = arith.constant 0 : i32
    %c0_i32_1 = arith.constant 0 : i32
    return %c0_i32, %c0_i32_0 : i32, i32
  }
  func.func @transform_2(%arg0: i32) -> (i32, i32) {
    %c0_i32 = arith.constant 0 : i32
    %c0_i32_0 = arith.constant 0 : i32
    %c0_i32_1 = arith.constant 0 : i32
    return %c0_i32, %c0_i32_0 : i32, i32
  }
  func.func @transform_3(%arg0: i32) -> (i32, i32) {
    %c0_i32 = arith.constant 0 : i32
    %c0_i32_0 = arith.constant 0 : i32
    %c0_i32_1 = arith.constant 0 : i32
    return %c0_i32, %c0_i32_0 : i32, i32
  }
  func.func @transform_4(%arg0: i32) -> (i32, i32) {
    %c0_i32 = arith.constant 0 : i32
    %c0_i32_0 = arith.constant 0 : i32
    %c0_i32_1 = arith.constant 0 : i32
    return %c0_i32, %c0_i32_0 : i32, i32
  }
  func.func @transform_5(%arg0: i32) -> (i32, i32) {
    %c0_i32 = arith.constant 0 : i32
    %c0_i32_0 = arith.constant 0 : i32
    %c0_i32_1 = arith.constant 0 : i32
    return %c0_i32, %c0_i32_0 : i32, i32
  }
  func.func @transform_6(%arg0: i32) -> (i32, i32) {
    %c0_i32 = arith.constant 0 : i32
    %c0_i32_0 = arith.constant 0 : i32
    %c0_i32_1 = arith.constant 0 : i32
    return %c0_i32, %c0_i32_0 : i32, i32
  }
  func.func @transform_7(%arg0: i32) -> (i32, i32) {
    %c0_i32 = arith.constant 0 : i32
    %c0_i32_0 = arith.constant 0 : i32
    return %c0_i32, %arg0 : i32, i32
  }
}

</mosaic_0001>

<bundles_post_ra>
// kernel: tpu_custom_call.1
= control target key start
LH: loop header
LB: loop body
LE: loop exit
PB: predicated region body
PF: predicated region fallthrough
CT: control target
= control target key end

     0   :  { %vm101_vm0 = vcmask 130048   ;;  %v709_v5 = vmov 0   ;;  %s904_s0 = inlined_call_operand.vmem [shape: f32[10,16], index: 0, kind: input, shape index: {}]   ;;  %s905_s1 = inlined_call_operand.vmem [shape: f32[16,32], index: 1, kind: input, shape index: {}]   ;;  %s906_s2 = inlined_call_operand.vmem [shape: f32[32,1], index: 2, kind: input, shape index: {}]   ;;  %s907_s3 = inlined_call_operand.vmem [shape: f32[32,16], index: 3, kind: input, shape index: {}]   ;;  %s908_s4 = inlined_call_operand.vmem [shape: f32[16,1], index: 4, kind: input, shape index: {}]   ;;  %s909_s5 = inlined_call_operand.vmem [shape: f32[16,3], index: 5, kind: input, shape index: {}]   ;;  %s910_s6 = inlined_call_operand.vmem [shape: f32[3,1], index: 6, kind: input, shape index: {}]   ;;  %s911_s7 = inlined_call_operand.hbm [shape: f32[3,10], index: 7, kind: output, shape index: {}]  }
   0x1   :  { %v43_v0 = vld [vmem:[%s905_s1] sm:$0xff]  ;;  %v28_v2 = vld [vmem:[%s904_s0 + $0x8] sm:$0xff]  ;;  %vm765_vm1 = vmpackc.low %vm101_vm0, %vm101_vm0  ;;  %683 = vset.pattern.permute.xlu1 %v709_v5 }
   0x2   :  { %v27_v1 = vld [vmem:[%s904_s0] sm:$0xff]  ;;  %69 = vxpose.xlu0.b32.start [1/2] (short) (narrow) %v43_v0, 32  ;;  %v29_v4 = vld [vmem:[%s904_s0 + $0x10] sm:$0xff]  ;;  %v44_v6 = vld [vmem:[%s905_s1 + $0x8] sm:$0xff] }
   0x3   :  { %v619_v7 = vpack.c.bf16 %v28_v2, %v27_v1  ;;  %v30_v8 = vld [vmem:[%s904_s0 + $0x18] sm:$0xff]  ;;  %v45_v10 = vld [vmem:[%s906_s2] sm:$0xff]  ;;  %v46_v11 = vld [vmem:[%s906_s2 + $0x8] sm:$0xff] }
   0x4   :  { %v625_v9 = vpack.c.bf16 %v30_v8, %v29_v4  ;;  %51 = vperm.xlu1 %683, %v45_v10   ;;  %v31_v12 = vld [vmem:[%s904_s0 + $0x20] sm:$0xff]  ;;  %v32_v13 = vld [vmem:[%s904_s0 + $0x28] sm:$0xff] }
   0x5   :  { %621 = vmatprep.subr.msk.bf16.mxu0 %vm765_vm1, %v619_v7 }
   0x6   :  { %70 = vxpose.xlu0.b32.end [2/2] (short) (narrow) %v44_v6, 32  ;;  %624 = vmatpush3.bf16.xpose.msk.msra.mxu0 %vm765_vm1, %v619_v7 }
   0x7   :  { %627 = vmatprep.subr.msk.bf16.mxu0 %vm765_vm1, %v625_v9 }
   0x8   :  { %12 = vsyncpa [#allocation3], 0  ;;  %56 = vperm.xlu1 %683, %v46_v11   ;;  %v48_v14 = vld [vmem:[%s906_s2 + $0x18] sm:$0xff]  ;;  %v631_v15 = vpack.c.bf16 %v32_v13, %v31_v12  ;;  %v33_v16 = vld [vmem:[%s904_s0 + $0x30] sm:$0xff]  ;;  %vm299_vm2 = vcmask 261120   ;;  %v710_v1 = vmov 0.0|0.0  }
   0x9   :  { %v34_v17 = vld [vmem:[%s904_s0 + $0x38] sm:$0xff]  ;;  %v35_v19 = vld [vmem:[%s904_s0 + $0x40] sm:$0xff]  ;;  %v36_v20 = vld [vmem:[%s904_s0 + $0x48] sm:$0xff]  ;;  %vm711_vm3 = vmmov 0   ;;  %v712_v2 = vmov 0.0  }
   0xa   :  { %v637_v18 = vpack.c.bf16 %v34_v17, %v33_v16  ;;  %v643_v21 = vpack.c.bf16 %v36_v20, %v35_v19  ;;  %v37_v22 = vld [vmem:[%s904_s0 + $0x50] sm:$0xff]  ;;  %v38_v23 = vld [vmem:[%s904_s0 + $0x58] sm:$0xff]  ;;  %v39_v25 = vld [vmem:[%s904_s0 + $0x60] sm:$0xff] }
   0xb   :  { %v649_v24 = vpack.c.bf16 %v38_v23, %v37_v22  ;;  %v40_v26 = vld [vmem:[%s904_s0 + $0x68] sm:$0xff]  ;;  %v41_v28 = vld [vmem:[%s904_s0 + $0x70] sm:$0xff]  ;;  %v42_v29 = vld [vmem:[%s904_s0 + $0x78] sm:$0xff] }
   0xc   :  { %66 = vperm.xlu1 %683, %v48_v14   ;;  %v655_v27 = vpack.c.bf16 %v40_v26, %v39_v25  ;;  %v661_v30 = vpack.c.bf16 %v42_v29, %v41_v28  ;;  %v251_v31 = vld [vmem:[%s907_s3] sm:$0xff]  ;;  %v47_v32 = vld [vmem:[%s906_s2 + $0x10] sm:$0xff]  ;;  %v252_v33 = vld [vmem:[%s907_s3 + $0x8] sm:$0xff] }
   0xd   :  { %v255_v34 = vld [vmem:[%s908_s4] sm:$0xff]  ;;  %v253_v35 = vld [vmem:[%s907_s3 + $0x10] sm:$0xff]  ;;  %v256_v36 = vld [vmem:[%s908_s4 + $0x8] sm:$0xff] }
   0xe   :  { %630 = vmatpush3.bf16.xpose.msk.msra.mxu0 %vm765_vm1, %v625_v9  ;;  %v254_v37 = vld [vmem:[%s907_s3 + $0x18] sm:$0xff]  ;;  %v385_v38 = vld [vmem:[%s910_s6] sm:$0x7]  ;;  %v384_v48 = vld [vmem:[%s909_s5 + $0x8] sm:$0xff] }
   0xf   :  { %633 = vmatprep.subr.msk.bf16.mxu0 %vm765_vm1, %v631_v15  ;;  %v383_v47 = vld [vmem:[%s909_s5] sm:$0xff]  ;;  %s713_s5 = smov [#allocation2]  }
  0x10   :  { %s503_s10 = sshll.u32 %s713_s5, 4  ;;  %s504_s10 = int_to_ptr.vmem [resolvable:$true] %s503_s10 }
  0x11   :  { %s685_s11 = scalar_lea.vmem %s504_s10, 64  ;;  %p690_p1 = scmp.lt.s32.totalorder %s504_s10, %s504_s10 }
  0x12   :  { %p686_p0 = scmp.ne.s32.totalorder %s504_s10, %s685_s11  ;;  %p691_p2 = scmp.lt.s32.totalorder %s685_s11, %s685_s11 }
  0x14   :  { %p692_p3 = por %p691_p2, %p690_p1 }
  0x16   :  { %636 = vmatpush3.bf16.xpose.msk.msra.mxu0 %vm765_vm1, %v631_v15  ;;  %p693_p4 = pnand %p692_p3, %p686_p0 }
  0x17   :  { %639 = vmatprep.subr.msk.bf16.mxu0 %vm765_vm1, %v637_v18 }
  0x1e   :  { %642 = vmatpush3.bf16.xpose.msk.msra.mxu0 %vm765_vm1, %v637_v18 }
  0x1f   :  { %645 = vmatprep.subr.msk.bf16.mxu0 %vm765_vm1, %v643_v21 }
  0x26   :  { %648 = vmatpush3.bf16.xpose.msk.msra.mxu0 %vm765_vm1, %v643_v21 }
  0x27   :  { %651 = vmatprep.subr.msk.bf16.mxu0 %vm765_vm1, %v649_v24 }
  0x2e   :  { %654 = vmatpush3.bf16.xpose.msk.msra.mxu0 %vm765_vm1, %v649_v24 }
  0x2f   :  { %657 = vmatprep.subr.msk.bf16.mxu0 %vm765_vm1, %v655_v27  ;;  %684 = vset.pattern.permute.xlu0 %v709_v5 }
  0x35   :  { %267 = vxpose.xlu1.b32.start [1/4] (short) (narrow) %v251_v31, 16 }
  0x36   :  { %660 = vmatpush3.bf16.xpose.msk.msra.mxu0 %vm765_vm1, %v655_v27 }
  0x37   :  { %663 = vmatprep.subr.msk.bf16.mxu0 %vm765_vm1, %v661_v30  ;;  %61 = vperm.xlu0 %684, %v47_v32  }
  0x39   :  { %268 = vxpose.xlu1.b32.cont [2/4] (short) (narrow) %v252_v33, 16 }
  0x3b   :  { %259 = vperm.xlu0 %684, %v255_v34  }
  0x3d   :  { %269 = vxpose.xlu1.b32.cont [3/4] (short) (narrow) %v253_v35, 16 }
  0x3e   :  { %666 = vmatpush3.bf16.xpose.msk.msra.mxu0 %vm765_vm1, %v661_v30 }
  0x3f   :  { %264 = vperm.xlu0 %684, %v256_v36  }
  0x41   :  { %270 = vxpose.xlu1.b32.end [4/4] (short) (narrow) %v254_v37, 16 }
  0x5d   :  { %391 = vxpose.xlu0.b32.start [1/2] (short) (narrow) %v383_v47, 8 }
  0x5f   :  { %388 = vperm.xlu1 %683, %v385_v38  }
  0x61   :  { %392 = vxpose.xlu0.b32.end [2/2] (short) (narrow) %v384_v48, 8 }
  0x82   :  { %v85_v39 = vpop.trf.xlu0 }
  0x83   :  { %595 = vmatprep.mubr.msk.f32.mxu0 %vm101_vm0, %v85_v39  ;;  %v52_v43 = vpop.permute.xlu1 %51 }
  0x86   :  { %v86_v40 = vpop.trf.xlu0 }
  0x87   :  { %596 = vmatmul.mubr.msk.f32.vlgmr.msra.gmra.mrb[0].mxu0 %vm101_vm0, %v86_v40  ;;  %v57_v44 = vpop.permute.xlu1 %56 }
  0x8a   :  { %v87_v41 = vpop.trf.xlu0 }
  0x8b   :  { %598 = vmatprep.mubr.msk.f32.mxu0 %vm101_vm0, %v87_v41  ;;  %v67_v45 = vpop.permute.xlu1 %66 }
  0x8e   :  { %v88_v42 = vpop.trf.xlu0 }
  0x8f   :  { %599 = vmatmul.mubr.msk.f32.gmra.mrb[2].mxu0 %vm101_vm0, %v88_v42 }
  0xb5   :  { %v283_v46 = vpop.trf.xlu1 }
  0xb6   :  { %609 = vmatprep.mubr.msk.f32.mxu1 %vm299_vm2, %v283_v46  ;;  %v62_v57 = vpop.permute.xlu0 %61 }
  0xb9   :  { %v284_v0 = vpop.trf.xlu1 }
  0xba   :  { %v260_v3 = vpop.permute.xlu0 %259 }
  0xbe   :  { %v265_v4 = vpop.permute.xlu0 %264 }
  0xdd   :  { %v407_v12 = vpop.trf.xlu0 }
  0xde   :  { %v389_v13 = vpop.permute.xlu1 %388 }
 0x15a   :  { %v597_v49 = vpop.f32.mrb[0].mxu0 }
 0x15b   :  { %v234_v50 = vadd.f32 %v597_v49, %v57_v44  ;;  %v228_v51 = vpop.f32.mrb[1].mxu0 }
 0x15c   :  { %v229_v52 = vadd.f32 %v228_v51, %v52_v43 }
 0x15d   :  { %v248_v53 = vmax.f32 %v234_v50, 0.0 }
 0x15e   :  { %v247_v54 = vmax.f32 %v229_v52, 0.0 }
 0x160   :  { %v667_v55 = vpack.c.bf16 %v248_v53, %v247_v54 }
 0x162   :  { %v600_v56 = vpop.f32.mrb[2].mxu0  ;;  %668 = vmatprep.subr.bf16.mxu1 %v667_v55 }
 0x163   :  { %v244_v58 = vadd.f32 %v600_v56, %v67_v45  ;;  %v238_v59 = vpop.f32.mrb[3].mxu0  ;;  %670 = vmatpush3.bf16.msra.mxu1 %v667_v55 }
 0x164   :  { %v239_v60 = vadd.f32 %v238_v59, %v62_v57 }
 0x165   :  { %v250_v61 = vmax.f32 %v244_v58, 0.0 }
 0x166   :  { %v249_v62 = vmax.f32 %v239_v60, 0.0 }
 0x168   :  { %v671_v63 = vpack.c.bf16 %v250_v61, %v249_v62 }
 0x16a   :  { %672 = vmatprep.subr.bf16.mxu1 %v671_v63 }
 0x16b   :  { %674 = vmatpush3.bf16.msra.mxu1 %v671_v63 }
 0x16c   :  { %675 = vmatprep.subr.bf16.mxu1 %v710_v1 }
 0x16e   :  { %610 = vmatmul.mubr.msk.f32.vlgmr.msra.gmra.mrb[0].mxu1 %vm299_vm2, %v284_v0 }
 0x16f   :  { %616 = vmatprep.mubr.msk.f32.mxu1 %vm711_vm3, %v712_v2 }
 0x241   :  { %v611_v5 = vpop.f32.mrb[0].mxu1 }
 0x242   :  { %v378_v6 = vadd.f32 %v611_v5, %v265_v4  ;;  %v372_v7 = vpop.f32.mrb[1].mxu1 }
 0x243   :  { %v373_v8 = vadd.f32 %v372_v7, %v260_v3 }
 0x244   :  { %v382_v9 = vmax.f32 %v378_v6, 0.0 }
 0x245   :  { %v381_v10 = vmax.f32 %v373_v8, 0.0 }
 0x247   :  { %v676_v11 = vpack.c.bf16 %v382_v9, %v381_v10 }
 0x249   :  { %677 = vmatpush3.bf16.msra.mxu1 %v676_v11 }
 0x24c   :  { %617 = vmatmul.mubr.msk.f32.vlgmr.msra.gmra.mrb[2].mxu1 %vm101_vm0, %v407_v12 }
 0x31f   :  { %v492_v14 = vpop.f32.mrb[2].mxu1 }
 0x320   :  { %v493_v15 = vadd.f32 %v492_v14, %v389_v13  ;;  %v618_v16 = vpop.f32.mrb[3].mxu1 }
 0x322   :  { %496 = vst [vmem:[#allocation2] sm:$0x7] %v493_v15 }
 0x323   :  { %696 = shalt.err (!%p693_p4)
}
 0x324   :  { %s697_s14 = scalar_lea.hbm %s911_s7, 64 }
 0x325   :  { %p698_p5 = scmp.ne.s32.totalorder %s911_s7, %s697_s14  ;;  %p701_p6 = scmp.lt.u32.totalorder %s697_s14, %s911_s7 }
 0x327   :  { %p703_p7 = pnand %p701_p6, %p698_p5 }
 0x329   :  { %706 = shalt.err (!%p703_p7)
}
 0x32a   :  { %506 = dma.vmem_to_hbm [thread:$0]  %s504_s10, 64, %s911_s7, [#allocation3]  }
 0x32b   :  { %707 = dma.done.wait [#allocation3], 64  }
 0x32c   :  { %708 = vsyncadd [#allocation3], 4294967232 }
 0x32d   :  { %510 = vsyncpa [#allocation3], 1 }

</bundles_post_ra>
